<compile_context>
chip_gen: v7x
topology: tpu7x:2x2x1
jax: 0.10.0
libtpu: 0.0.40
codegen_flags: <defaults>
</compile_context>

<pallas_src>
import jax
import jax.numpy as jnp
from jax.experimental import pallas as pl
from jax.experimental.pallas import tpu as pltpu

NUM_ACTIONS = 8
NUM_STATES = 15
H1 = 256
H2 = 128
K_PAD = NUM_STATES + 1   # 16: extra "ones" column folds the layer-1 bias into the weight matrix


def _dueling_dqn_kernel(x_ref, w1_ref, w2_ref, b2_ref, wo_ref, bo_ref, out_ref):
    x = x_ref[...]                                                         # [TB, 16], col 15 == 1
    # ---- layer 1 (adv / val), bias folded into row 15 of each weight ----
    ha = jnp.maximum(jnp.dot(x, w1_ref[0], preferred_element_type=jnp.float32), 0.0)   # [TB, 256]
    hv = jnp.maximum(jnp.dot(x, w1_ref[1], preferred_element_type=jnp.float32), 0.0)   # [TB, 256]
    # ---- layer 2 (adv / val) ----
    ha = jnp.maximum(jnp.dot(ha, w2_ref[0], preferred_element_type=jnp.float32) + b2_ref[0], 0.0)
    hv = jnp.maximum(jnp.dot(hv, w2_ref[1], preferred_element_type=jnp.float32) + b2_ref[1], 0.0)
    # ---- output head: dueling mean-subtraction and value broadcast folded into wo / bo ----
    out_ref[...] = (jnp.dot(ha, wo_ref[0], preferred_element_type=jnp.float32)
                    + jnp.dot(hv, wo_ref[1], preferred_element_type=jnp.float32)
                    + bo_ref[...])                                          # [TB, 8] Q-values


def _linear_init(key, fan_in, fan_out):
    """PyTorch nn.Linear default init: U(-1/sqrt(fan_in), 1/sqrt(fan_in)); stored as [in, out]."""
    kw, kb = jax.random.split(key)
    bound = 1.0 / jnp.sqrt(jnp.asarray(fan_in, jnp.float32))
    w = jax.random.uniform(kw, (fan_in, fan_out), jnp.float32, -bound, bound)
    b = jax.random.uniform(kb, (1, fan_out), jnp.float32, -bound, bound)
    return w, b


def init_params(key):
    keys = jax.random.split(key, 6)
    w1a, b1a = _linear_init(keys[0], NUM_STATES, H1)
    w1v, b1v = _linear_init(keys[1], NUM_STATES, H1)
    w2a, b2a = _linear_init(keys[2], H1, H2)
    w2v, b2v = _linear_init(keys[3], H1, H2)
    woa, boa = _linear_init(keys[4], H2, NUM_ACTIONS)
    wov, bov = _linear_init(keys[5], H2, 1)
    return dict(w1a=w1a, b1a=b1a, w1v=w1v, b1v=b1v,
                w2a=w2a, b2a=b2a, w2v=w2v, b2v=b2v,
                woa=woa, boa=boa, wov=wov, bov=bov)


def prepare_params(params):
    """One-time fusion of raw per-layer params into the 5 kernel weight operands (run once, reuse)."""
    f32 = jnp.float32

    def fold_bias(w, b):
        # [15, N] weight + [1, N] bias -> [16, N] with bias in row 15 (matched by the ones column).
        wp = jnp.zeros((K_PAD, w.shape[1]), f32)
        wp = wp.at[:NUM_STATES, :].set(w)
        wp = wp.at[NUM_STATES, :].set(b[0])
        return wp

    w1 = jnp.stack([fold_bias(params["w1a"], params["b1a"]),
                    fold_bias(params["w1v"], params["b1v"])])               # [2, 16, 256]
    w2 = jnp.stack([params["w2a"], params["w2v"]])                          # [2, 256, 128]
    b2 = jnp.stack([params["b2a"], params["b2v"]])                          # [2, 1, 128]

    # Fold "A - mean(A)" (M = I - J/8) into the adv head and broadcast V over the 8 actions.
    M = jnp.eye(NUM_ACTIONS, dtype=f32) - 1.0 / NUM_ACTIONS                 # [8, 8]
    woa_c = params["woa"] @ M                                               # [128, 8]
    wov_b = jnp.broadcast_to(params["wov"], (H2, NUM_ACTIONS))              # [128, 8]
    wo = jnp.stack([woa_c, wov_b])                                          # [2, 128, 8]
    bo = params["boa"] @ M + params["bov"]                                  # [1, 8]

    return dict(w1=w1, w2=w2, b2=b2, wo=wo, bo=bo)


def _round_up(a, m):
    return (a + m - 1) // m * m


def net_forward(x, fused):
    """x: [B, NUM_STATES] float32 -> [B, NUM_ACTIONS] float32 Q-values."""
    B = x.shape[0]
    x = x.astype(jnp.float32)

    # Batch tile: multiple of 8 sublanes; cap at 128 and tile the grid for large replay batches.
    TB = 128 if B > 128 else _round_up(B, 8)
    B_pad = _round_up(B, TB)

    # Append the ones column (bias fold) and pad the batch to B_pad in one shot.
    x_p = jnp.pad(jnp.concatenate([x, jnp.ones((B, 1), jnp.float32)], axis=1),
                  ((0, B_pad - B), (0, 0)))                                 # [B_pad, 16]

    def const3(shape):
        return pl.BlockSpec(shape, lambda i: (0, 0, 0))                     # weights: resident block

    out = pl.pallas_call(
        _dueling_dqn_kernel,
        out_shape=jax.ShapeDtypeStruct((B_pad, NUM_ACTIONS), jnp.float32),
        grid=(B_pad // TB,),
        in_specs=[
            pl.BlockSpec((TB, K_PAD), lambda i: (i, 0)),                    # x (batch-tiled)
            const3((2, K_PAD, H1)),                                         # W1 (bias folded)
            const3((2, H1, H2)),                                            # W2
            const3((2, 1, H2)),                                             # b2
            const3((2, H2, NUM_ACTIONS)),                                   # Wout (mean folded / V bcast)
            pl.BlockSpec((1, NUM_ACTIONS), lambda i: (0, 0)),               # bout
        ],
        out_specs=pl.BlockSpec((TB, NUM_ACTIONS), lambda i: (i, 0)),
        compiler_params=pltpu.CompilerParams(
            dimension_semantics=("parallel",),                              # batch tiles shard across TCs
        ),
    )(x_p, fused["w1"], fused["w2"], fused["b2"], fused["wo"], fused["bo"])

    return out[:B]


def net_forward_ref(x, params):
    """Pure-JAX reference mirroring the PyTorch forward (unfused)."""
    x = x.astype(jnp.float32)
    adv = jax.nn.relu(x @ params["w1a"] + params["b1a"])
    val = jax.nn.relu(x @ params["w1v"] + params["b1v"])
    adv = jax.nn.relu(adv @ params["w2a"] + params["b2a"])
    val = jax.nn.relu(val @ params["w2v"] + params["b2v"])
    adv = adv @ params["woa"] + params["boa"]
    val = val @ params["wov"] + params["bov"]                               # [B, 1]
    return val + adv - jnp.mean(adv, axis=1, keepdims=True)


if __name__ == "__main__":
    key = jax.random.PRNGKey(0)
    k_params, k_x = jax.random.split(key)

    params = init_params(k_params)
    fused = prepare_params(params)          # one-time prep, reused across forward calls

    B = 4
    x = jax.random.normal(k_x, (B, NUM_STATES), jnp.float32)

    out = jax.block_until_ready(net_forward(x, fused))
    ref = net_forward_ref(x, params)

    assert out.shape == (B, NUM_ACTIONS)
    assert jnp.allclose(out, ref, atol=1e-4, rtol=1e-4), "Pallas kernel mismatch vs reference"

    print("KERNEL_OK")
</pallas_src>

<mosaic_0001>
module attributes {stable_mosaic.version = 11 : i64} {
  func.func @_dueling_dqn_kernel(%arg0: i32, %arg1: memref<8x16xf32, #tpu.memory_space<vmem>>, %arg2: memref<2x16x256xf32, #tpu.memory_space<vmem>>, %arg3: memref<2x256x128xf32, #tpu.memory_space<vmem>>, %arg4: memref<2x1x128xf32, #tpu.memory_space<vmem>>, %arg5: memref<2x128x8xf32, #tpu.memory_space<vmem>>, %arg6: memref<1x8xf32, #tpu.memory_space<vmem>>, %arg7: memref<8x8xf32, #tpu.memory_space<vmem>>) attributes {dimension_semantics = [#tpu.dimension_semantics<parallel>], iteration_bounds = array<i64: 1>, scalar_prefetch = 0 : i64, scratch_operands = 0 : i64, tpu.core_type = #tpu.core_type<tc>, window_params = [{transform_indices = @transform_0, window_bounds = array<i64: 8, 16>}, {pipeline_mode = #tpu.pipeline_mode<synchronous>, transform_indices = @transform_1, window_bounds = array<i64: 2, 16, 256>}, {pipeline_mode = #tpu.pipeline_mode<synchronous>, transform_indices = @transform_2, window_bounds = array<i64: 2, 256, 128>}, {pipeline_mode = #tpu.pipeline_mode<synchronous>, transform_indices = @transform_3, window_bounds = array<i64: 2, 1, 128>}, {pipeline_mode = #tpu.pipeline_mode<synchronous>, transform_indices = @transform_4, window_bounds = array<i64: 2, 128, 8>}, {pipeline_mode = #tpu.pipeline_mode<synchronous>, transform_indices = @transform_5, window_bounds = array<i64: 1, 8>}, {transform_indices = @transform_6, window_bounds = array<i64: 8, 8>}]} {
    %c0 = arith.constant 0 : index
    %c0_0 = arith.constant 0 : index
    %0 = vector.load %arg1[%c0, %c0_0] : memref<8x16xf32, #tpu.memory_space<vmem>>, vector<8x16xf32>
    %c0_1 = arith.constant 0 : index
    %c0_2 = arith.constant 0 : index
    %c0_3 = arith.constant 0 : index
    %1 = vector.load %arg2[%c0_1, %c0_2, %c0_3] : memref<2x16x256xf32, #tpu.memory_space<vmem>>, vector<1x16x256xf32>
    %2 = vector.shape_cast %1 : vector<1x16x256xf32> to vector<16x256xf32>
    %cst = arith.constant dense<0.000000e+00> : vector<8x256xf32>
    %3 = tpu.matmul %0, %2, %cst {dimension_numbers = #tpu.dot_dimension_numbers<[1], [0], [0], [1], [0, 0, 1, 1], [], []>} : vector<8x16xf32>, vector<16x256xf32>, vector<8x256xf32> -> vector<8x256xf32>
    %cst_4 = arith.constant 0.000000e+00 : f32
    %4 = vector.broadcast %cst_4 : f32 to vector<8x256xf32>
    %5 = arith.maximumf %3, %4 : vector<8x256xf32>
    %c1 = arith.constant 1 : index
    %c0_5 = arith.constant 0 : index
    %c0_6 = arith.constant 0 : index
    %6 = vector.load %arg2[%c1, %c0_5, %c0_6] : memref<2x16x256xf32, #tpu.memory_space<vmem>>, vector<1x16x256xf32>
    %7 = vector.shape_cast %6 : vector<1x16x256xf32> to vector<16x256xf32>
    %cst_7 = arith.constant dense<0.000000e+00> : vector<8x256xf32>
    %8 = tpu.matmul %0, %7, %cst_7 {dimension_numbers = #tpu.dot_dimension_numbers<[1], [0], [0], [1], [0, 0, 1, 1], [], []>} : vector<8x16xf32>, vector<16x256xf32>, vector<8x256xf32> -> vector<8x256xf32>
    %cst_8 = arith.constant 0.000000e+00 : f32
    %9 = vector.broadcast %cst_8 : f32 to vector<8x256xf32>
    %10 = arith.maximumf %8, %9 : vector<8x256xf32>
    %c0_9 = arith.constant 0 : index
    %c0_10 = arith.constant 0 : index
    %c0_11 = arith.constant 0 : index
    %11 = vector.load %arg3[%c0_9, %c0_10, %c0_11] : memref<2x256x128xf32, #tpu.memory_space<vmem>>, vector<1x256x128xf32>
    %12 = vector.shape_cast %11 : vector<1x256x128xf32> to vector<256x128xf32>
    %cst_12 = arith.constant dense<0.000000e+00> : vector<8x128xf32>
    %13 = tpu.matmul %5, %12, %cst_12 {dimension_numbers = #tpu.dot_dimension_numbers<[1], [0], [0], [1], [0, 0, 1, 1], [], []>} : vector<8x256xf32>, vector<256x128xf32>, vector<8x128xf32> -> vector<8x128xf32>
    %c0_13 = arith.constant 0 : index
    %c0_14 = arith.constant 0 : index
    %c0_15 = arith.constant 0 : index
    %14 = vector.load %arg4[%c0_13, %c0_14, %c0_15] : memref<2x1x128xf32, #tpu.memory_space<vmem>>, vector<1x1x128xf32>
    %15 = vector.shape_cast %14 : vector<1x1x128xf32> to vector<1x128xf32>
    %16 = vector.broadcast %15 : vector<1x128xf32> to vector<8x128xf32>
    %17 = arith.addf %13, %16 : vector<8x128xf32>
    %cst_16 = arith.constant 0.000000e+00 : f32
    %18 = vector.broadcast %cst_16 : f32 to vector<8x128xf32>
    %19 = arith.maximumf %17, %18 : vector<8x128xf32>
    %c1_17 = arith.constant 1 : index
    %c0_18 = arith.constant 0 : index
    %c0_19 = arith.constant 0 : index
    %20 = vector.load %arg3[%c1_17, %c0_18, %c0_19] : memref<2x256x128xf32, #tpu.memory_space<vmem>>, vector<1x256x128xf32>
    %21 = vector.shape_cast %20 : vector<1x256x128xf32> to vector<256x128xf32>
    %cst_20 = arith.constant dense<0.000000e+00> : vector<8x128xf32>
    %22 = tpu.matmul %10, %21, %cst_20 {dimension_numbers = #tpu.dot_dimension_numbers<[1], [0], [0], [1], [0, 0, 1, 1], [], []>} : vector<8x256xf32>, vector<256x128xf32>, vector<8x128xf32> -> vector<8x128xf32>
    %c1_21 = arith.constant 1 : index
    %c0_22 = arith.constant 0 : index
    %c0_23 = arith.constant 0 : index
    %23 = vector.load %arg4[%c1_21, %c0_22, %c0_23] : memref<2x1x128xf32, #tpu.memory_space<vmem>>, vector<1x1x128xf32>
    %24 = vector.shape_cast %23 : vector<1x1x128xf32> to vector<1x128xf32>
    %25 = vector.broadcast %24 : vector<1x128xf32> to vector<8x128xf32>
    %26 = arith.addf %22, %25 : vector<8x128xf32>
    %cst_24 = arith.constant 0.000000e+00 : f32
    %27 = vector.broadcast %cst_24 : f32 to vector<8x128xf32>
    %28 = arith.maximumf %26, %27 : vector<8x128xf32>
    %c0_25 = arith.constant 0 : index
    %c0_26 = arith.constant 0 : index
    %c0_27 = arith.constant 0 : index
    %29 = vector.load %arg5[%c0_25, %c0_26, %c0_27] : memref<2x128x8xf32, #tpu.memory_space<vmem>>, vector<1x128x8xf32>
    %30 = vector.shape_cast %29 : vector<1x128x8xf32> to vector<128x8xf32>
    %cst_28 = arith.constant dense<0.000000e+00> : vector<8x8xf32>
    %31 = tpu.matmul %19, %30, %cst_28 {dimension_numbers = #tpu.dot_dimension_numbers<[1], [0], [0], [1], [0, 0, 1, 1], [], []>} : vector<8x128xf32>, vector<128x8xf32>, vector<8x8xf32> -> vector<8x8xf32>
    %c1_29 = arith.constant 1 : index
    %c0_30 = arith.constant 0 : index
    %c0_31 = arith.constant 0 : index
    %32 = vector.load %arg5[%c1_29, %c0_30, %c0_31] : memref<2x128x8xf32, #tpu.memory_space<vmem>>, vector<1x128x8xf32>
    %33 = vector.shape_cast %32 : vector<1x128x8xf32> to vector<128x8xf32>
    %cst_32 = arith.constant dense<0.000000e+00> : vector<8x8xf32>
    %34 = tpu.matmul %28, %33, %cst_32 {dimension_numbers = #tpu.dot_dimension_numbers<[1], [0], [0], [1], [0, 0, 1, 1], [], []>} : vector<8x128xf32>, vector<128x8xf32>, vector<8x8xf32> -> vector<8x8xf32>
    %35 = arith.addf %31, %34 : vector<8x8xf32>
    %c0_33 = arith.constant 0 : index
    %c0_34 = arith.constant 0 : index
    %36 = vector.load %arg6[%c0_33, %c0_34] : memref<1x8xf32, #tpu.memory_space<vmem>>, vector<1x8xf32>
    %37 = vector.broadcast %36 : vector<1x8xf32> to vector<8x8xf32>
    %38 = arith.addf %35, %37 : vector<8x8xf32>
    %c0_35 = arith.constant 0 : index
    %c0_36 = arith.constant 0 : index
    %39 = vector.load %arg7[%c0_35, %c0_36] : memref<8x8xf32, #tpu.memory_space<vmem>>, vector<8x8xf32>
    tpu.vector_store %arg7[%c0_35, %c0_36], %38 {strides = array<i32>} : memref<8x8xf32, #tpu.memory_space<vmem>>, vector<8x8xf32>,
    return
  }
  func.func @transform_0(%arg0: i32) -> (i32, i32) {
    %c0_i32 = arith.constant 0 : i32
    %c0_i32_0 = arith.constant 0 : i32
    return %arg0, %c0_i32 : i32, i32
  }
  func.func @transform_1(%arg0: i32) -> (i32, i32, i32) {
    %c0_i32 = arith.constant 0 : i32
    %c0_i32_0 = arith.constant 0 : i32
    %c0_i32_1 = arith.constant 0 : i32
    %c0_i32_2 = arith.constant 0 : i32
    return %c0_i32, %c0_i32_0, %c0_i32_1 : i32, i32, i32
  }
  func.func @transform_2(%arg0: i32) -> (i32, i32, i32) {
    %c0_i32 = arith.constant 0 : i32
    %c0_i32_0 = arith.constant 0 : i32
    %c0_i32_1 = arith.constant 0 : i32
    %c0_i32_2 = arith.constant 0 : i32
    return %c0_i32, %c0_i32_0, %c0_i32_1 : i32, i32, i32
  }
  func.func @transform_3(%arg0: i32) -> (i32, i32, i32) {
    %c0_i32 = arith.constant 0 : i32
    %c0_i32_0 = arith.constant 0 : i32
    %c0_i32_1 = arith.constant 0 : i32
    %c0_i32_2 = arith.constant 0 : i32
    return %c0_i32, %c0_i32_0, %c0_i32_1 : i32, i32, i32
  }
  func.func @transform_4(%arg0: i32) -> (i32, i32, i32) {
    %c0_i32 = arith.constant 0 : i32
    %c0_i32_0 = arith.constant 0 : i32
    %c0_i32_1 = arith.constant 0 : i32
    %c0_i32_2 = arith.constant 0 : i32
    return %c0_i32, %c0_i32_0, %c0_i32_1 : i32, i32, i32
  }
  func.func @transform_5(%arg0: i32) -> (i32, i32) {
    %c0_i32 = arith.constant 0 : i32
    %c0_i32_0 = arith.constant 0 : i32
    %c0_i32_1 = arith.constant 0 : i32
    return %c0_i32, %c0_i32_0 : i32, i32
  }
  func.func @transform_6(%arg0: i32) -> (i32, i32) {
    %c0_i32 = arith.constant 0 : i32
    %c0_i32_0 = arith.constant 0 : i32
    return %arg0, %c0_i32 : i32, i32
  }
}

</mosaic_0001>

<bundles_post_ra>
// kernel: tpu_custom_call.1
= control target key start
LH: loop header
LB: loop body
LE: loop exit
PB: predicated region body
PF: predicated region fallthrough
CT: control target
= control target key end

     0   :  { %11 = vsyncpa [#allocation3], 0  ;;  %s1213_s0 = inlined_call_operand.vmem [shape: f32[8,16], index: 0, kind: input, shape index: {}]   ;;  %s1214_s1 = inlined_call_operand.vmem [shape: f32[2,16,256], index: 1, kind: input, shape index: {}]   ;;  %s1215_s2 = inlined_call_operand.hbm [shape: f32[2,256,128], index: 2, kind: input, shape index: {}]   ;;  %s1216_s3 = inlined_call_operand.vmem [shape: f32[2,1,128], index: 3, kind: input, shape index: {}]   ;;  %s1217_s4 = inlined_call_operand.vmem [shape: f32[2,128,8], index: 4, kind: input, shape index: {}]   ;;  %s1218_s5 = inlined_call_operand.vmem [shape: f32[1,8], index: 5, kind: input, shape index: {}]   ;;  %s1219_s6 = inlined_call_operand.hbm [shape: f32[8,8], index: 6, kind: output, shape index: {}]  }
   0x1   :  { %12 = vsyncpa [#allocation4], 0  ;;  %s993_s21 = smov [#allocation2]   ;;  %s945_s25 = scalar_lea.hbm %s1215_s2, 8192 }
   0x2   :  { %s22_s22 = sshll.u32 %s993_s21, 4  ;;  %p946_p0 = scmp.ne.s32.totalorder %s1215_s2, %s945_s25  ;;  %s23_s22 = int_to_ptr.vmem [resolvable:$true] %s22_s22 }
   0x3   :  { %p949_p1 = scmp.lt.u32.totalorder %s945_s25, %s1215_s2 }
   0x5   :  { %p951_p2 = pnand %p949_p1, %p946_p0 }
   0x7   :  { %954 = shalt.err (!%p951_p2)
}
   0x8   :  { %s955_s30 = scalar_lea.vmem %s23_s22, 8192  ;;  %p960_p4 = scmp.lt.s32.totalorder %s23_s22, %s23_s22 }
   0x9   :  { %p956_p3 = scmp.ne.s32.totalorder %s23_s22, %s955_s30  ;;  %p961_p5 = scmp.lt.s32.totalorder %s955_s30, %s955_s30 }
   0xb   :  { %p962_p6 = por %p961_p5, %p960_p4 }
   0xd   :  { %p963_p7 = pnand %p962_p6, %p956_p3 }
   0xf   :  { %966 = shalt.err (!%p963_p7)
}
  0x10   :  { %s994_s7 = smov 128   ;;  %s995_s8 = smov 8  }
  0x11   :  { %28 = dma.hbm_to_vmem [thread:$0]  %s1215_s2, 8192, %s23_s22, [#allocation3], %s994_s7, %s994_s7, %s995_s8  }
  0x12   :  { %989 = dma.done.wait [#allocation3], 8192  }
  0x13   :  { %990 = vsyncadd [#allocation3], 4294959104  ;;  %v996_v0 = vmov 0.0   ;;  %v40_v1 = vld [vmem:[%s1214_s1 + $0x8] sm:$0xff]  ;;  %v42_v2 = vld [vmem:[%s1214_s1 + $0x18] sm:$0xff]  ;;  %vm43_vm0 = vcmask 130048  }
  0x14   :  { %111 = vmatprep.mubr.f32.mxu0 %v996_v0  ;;  %189 = vmatprep.mubr.f32.mxu1 %v996_v0  ;;  %v620_v3 = vld [vmem:[%s1214_s1 + $0x28] sm:$0xff]  ;;  %v818_v4 = vpack.c.bf16 %v42_v2, %v40_v1  ;;  %v622_v5 = vld [vmem:[%s1214_s1 + $0x38] sm:$0xff]  ;;  %v39_v6 = vld [vmem:[%s1214_s1] sm:$0xff]  ;;  %vm998_vm1 = vmmov 0   ;;  %s999_s2 = smov [#allocation5]   ;;  %vm601_vm2 = vcmask 64512  }
  0x15   :  { %v41_v7 = vld [vmem:[%s1214_s1 + $0x10] sm:$0xff]  ;;  %v822_v8 = vpack.c.bf16 %v622_v5, %v620_v3  ;;  %v619_v10 = vld [vmem:[%s1214_s1 + $0x20] sm:$0xff]  ;;  %v215_v15 = vld [vmem:[#allocation2 + $0x88] sm:$0xff]  ;;  %s609_s17 = sshll.u32 %s999_s2, 4  ;;  %s610_s17 = int_to_ptr.vmem [resolvable:$true] %s609_s17 }
  0x16   :  { %v820_v9 = vpack.c.bf16 %v41_v7, %v39_v6  ;;  %v621_v11 = vld [vmem:[%s1214_s1 + $0x30] sm:$0xff]  ;;  %v38_v12 = vld [vmem:[%s1213_s0] sm:$0xff]  ;;  %819 = vmatprep.subr.bf16.mxu0 %v818_v4  ;;  %v326_v18 = vld [vmem:[#allocation2 + $0x188] sm:$0xff]  ;;  %p972_p9 = scmp.lt.s32.totalorder %s610_s17, %s610_s17 }
  0x17   :  { %v824_v13 = vpack.c.bf16 %v621_v11, %v619_v10  ;;  %v214_v14 = vld [vmem:[#allocation2 + $0x80] sm:$0xff]  ;;  %823 = vmatprep.subr.bf16.mxu1 %v822_v8  ;;  %v199_v20 = vld [vmem:[#allocation2 + $0x8] sm:$0xff]  ;;  %v216_v25 = vld [vmem:[#allocation2 + $0x90] sm:$0xff] }
  0x18   :  { %v325_v16 = vld [vmem:[#allocation2 + $0x180] sm:$0xff]  ;;  %821 = vmatpush1.bf16.msra.mxu0 %v820_v9  ;;  %v826_v17 = vpack.c.bf16 %v215_v15, %v214_v14  ;;  %v310_v24 = vld [vmem:[#allocation2 + $0x108] sm:$0xff]  ;;  %v217_v27 = vld [vmem:[#allocation2 + $0x98] sm:$0xff] }
  0x19   :  { %v198_v19 = vld [vmem:[#allocation2] sm:$0xff]  ;;  %825 = vmatpush1.bf16.msra.mxu1 %v824_v13  ;;  %v858_v21 = vpack.c.bf16 %v326_v18, %v325_v16  ;;  %v327_v28 = vld [vmem:[#allocation2 + $0x190] sm:$0xff]  ;;  %v328_v29 = vld [vmem:[#allocation2 + $0x198] sm:$0xff]  ;;  %v830_v30 = vpack.c.bf16 %v217_v27, %v216_v25 }
  0x1a   :  { %v828_v22 = vpack.c.bf16 %v199_v20, %v198_v19  ;;  %v309_v23 = vld [vmem:[#allocation2 + $0x100] sm:$0xff]  ;;  %827 = vmatprep.subr.bf16.mxu0 %v826_v17  ;;  %v862_v31 = vpack.c.bf16 %v328_v29, %v327_v28  ;;  %v200_v32 = vld [vmem:[#allocation2 + $0x10] sm:$0xff]  ;;  %v201_v33 = vld [vmem:[#allocation2 + $0x18] sm:$0xff] }
  0x1b   :  { %v860_v26 = vpack.c.bf16 %v310_v24, %v309_v23  ;;  %618 = vmatmul.mubr.msk.f32.vlgmr.msra.gmra.mrb[0].mxu0 %vm43_vm0, %v38_v12  ;;  %859 = vmatprep.subr.bf16.mxu1 %v858_v21  ;;  %v311_v34 = vld [vmem:[#allocation2 + $0x110] sm:$0xff]  ;;  %v832_v35 = vpack.c.bf16 %v201_v33, %v200_v32  ;;  %v312_v36 = vld [vmem:[#allocation2 + $0x118] sm:$0xff]  ;;  %v218_v37 = vld [vmem:[#allocation2 + $0xa0] sm:$0xff] }
  0x1c   :  { %623 = vmatmul.mubr.msk.f32.vlgmr.msra.gmra.mrb[0].mxu1 %vm43_vm0, %v38_v12  ;;  %829 = vmatpush3.bf16.msra.mxu0 %v828_v22  ;;  %v219_v38 = vld [vmem:[#allocation2 + $0xa8] sm:$0xff]  ;;  %v864_v39 = vpack.c.bf16 %v312_v36, %v311_v34  ;;  %v329_v41 = vld [vmem:[#allocation2 + $0x1a0] sm:$0xff]  ;;  %v220_v48 = vld [vmem:[#allocation2 + $0xb0] sm:$0xff] }
  0x1d   :  { %861 = vmatpush3.bf16.msra.mxu1 %v860_v26  ;;  %831 = vmatprep.subr.bf16.mxu0 %v830_v30  ;;  %v834_v40 = vpack.c.bf16 %v219_v38, %v218_v37  ;;  %v330_v42 = vld [vmem:[#allocation2 + $0x1a8] sm:$0xff]  ;;  %v202_v43 = vld [vmem:[#allocation2 + $0x20] sm:$0xff]  ;;  %v221_v49 = vld [vmem:[#allocation2 + $0xb8] sm:$0xff] }
  0x1e   :  { %863 = vmatprep.subr.bf16.mxu1 %v862_v31  ;;  %v866_v44 = vpack.c.bf16 %v330_v42, %v329_v41  ;;  %v203_v45 = vld [vmem:[#allocation2 + $0x28] sm:$0xff]  ;;  %v313_v46 = vld [vmem:[#allocation2 + $0x120] sm:$0xff]  ;;  %v331_v50 = vld [vmem:[#allocation2 + $0x1b0] sm:$0xff]  ;;  %v838_v54 = vpack.c.bf16 %v221_v49, %v220_v48 }
  0x1f   :  { %v314_v47 = vld [vmem:[#allocation2 + $0x128] sm:$0xff]  ;;  %v836_v51 = vpack.c.bf16 %v203_v45, %v202_v43  ;;  %v332_v52 = vld [vmem:[#allocation2 + $0x1b8] sm:$0xff]  ;;  %v204_v55 = vld [vmem:[#allocation2 + $0x30] sm:$0xff] }
  0x20   :  { %833 = vmatpush3.bf16.msra.mxu0 %v832_v35  ;;  %v868_v53 = vpack.c.bf16 %v314_v47, %v313_v46  ;;  %v205_v56 = vld [vmem:[#allocation2 + $0x38] sm:$0xff]  ;;  %v315_v57 = vld [vmem:[#allocation2 + $0x130] sm:$0xff]  ;;  %v870_v58 = vpack.c.bf16 %v332_v52, %v331_v50  ;;  %v222_v60 = vld [vmem:[#allocation2 + $0xc0] sm:$0xff]  ;;  %v997_v47 = vmov 0.0|0.0  }
  0x21   :  { %865 = vmatpush3.bf16.msra.mxu1 %v864_v39  ;;  %835 = vmatprep.subr.bf16.mxu0 %v834_v40  ;;  %v316_v59 = vld [vmem:[#allocation2 + $0x138] sm:$0xff]  ;;  %v223_v61 = vld [vmem:[#allocation2 + $0xc8] sm:$0xff]  ;;  %v333_v62 = vld [vmem:[#allocation2 + $0x1c0] sm:$0xff]  ;;  %v840_v1 = vpack.c.bf16 %v205_v56, %v204_v55 }
  0x22   :  { %867 = vmatprep.subr.bf16.mxu1 %v866_v44  ;;  %v334_v63 = vld [vmem:[#allocation2 + $0x1c8] sm:$0xff]  ;;  %v872_v2 = vpack.c.bf16 %v316_v59, %v315_v57  ;;  %v842_v3 = vpack.c.bf16 %v223_v61, %v222_v60  ;;  %v206_v4 = vld [vmem:[#allocation2 + $0x40] sm:$0xff]  ;;  %v224_v9 = vld [vmem:[#allocation2 + $0xd0] sm:$0xff] }
  0x23   :  { %v207_v5 = vld [vmem:[#allocation2 + $0x48] sm:$0xff]  ;;  %v317_v6 = vld [vmem:[#allocation2 + $0x140] sm:$0xff]  ;;  %v874_v7 = vpack.c.bf16 %v334_v63, %v333_v62  ;;  %v225_v10 = vld [vmem:[#allocation2 + $0xd8] sm:$0xff] }
  0x24   :  { %837 = vmatpush3.bf16.msra.mxu0 %v836_v51  ;;  %v318_v8 = vld [vmem:[#allocation2 + $0x148] sm:$0xff]  ;;  %v335_v11 = vld [vmem:[#allocation2 + $0x1d0] sm:$0xff]  ;;  %v336_v12 = vld [vmem:[#allocation2 + $0x1d8] sm:$0xff]  ;;  %v844_v13 = vpack.c.bf16 %v207_v5, %v206_v4  ;;  %v846_v15 = vpack.c.bf16 %v225_v10, %v224_v9 }
  0x25   :  { %869 = vmatpush3.bf16.msra.mxu1 %v868_v53  ;;  %839 = vmatprep.subr.bf16.mxu0 %v838_v54  ;;  %v876_v14 = vpack.c.bf16 %v318_v8, %v317_v6  ;;  %v208_v16 = vld [vmem:[#allocation2 + $0x50] sm:$0xff]  ;;  %v209_v17 = vld [vmem:[#allocation2 + $0x58] sm:$0xff]  ;;  %v878_v19 = vpack.c.bf16 %v336_v12, %v335_v11  ;;  %v226_v21 = vld [vmem:[#allocation2 + $0xe0] sm:$0xff] }
  0x26   :  { %871 = vmatprep.subr.bf16.mxu1 %v870_v58  ;;  %v319_v18 = vld [vmem:[#allocation2 + $0x150] sm:$0xff]  ;;  %v320_v20 = vld [vmem:[#allocation2 + $0x158] sm:$0xff]  ;;  %v227_v22 = vld [vmem:[#allocation2 + $0xe8] sm:$0xff]  ;;  %v848_v25 = vpack.c.bf16 %v209_v17, %v208_v16 }
  0x27   :  { %v337_v23 = vld [vmem:[#allocation2 + $0x1e0] sm:$0xff]  ;;  %v338_v24 = vld [vmem:[#allocation2 + $0x1e8] sm:$0xff]  ;;  %v880_v26 = vpack.c.bf16 %v320_v20, %v319_v18  ;;  %v850_v27 = vpack.c.bf16 %v227_v22, %v226_v21  ;;  %v228_v35 = vld [vmem:[#allocation2 + $0xf0] sm:$0xff] }
  0x28   :  { %841 = vmatpush3.bf16.msra.mxu0 %v840_v1  ;;  %v210_v28 = vld [vmem:[#allocation2 + $0x60] sm:$0xff]  ;;  %v211_v29 = vld [vmem:[#allocation2 + $0x68] sm:$0xff]  ;;  %v882_v30 = vpack.c.bf16 %v338_v24, %v337_v23  ;;  %v229_v36 = vld [vmem:[#allocation2 + $0xf8] sm:$0xff] }
  0x29   :  { %873 = vmatpush3.bf16.msra.mxu1 %v872_v2  ;;  %843 = vmatprep.subr.bf16.mxu0 %v842_v3  ;;  %v321_v31 = vld [vmem:[#allocation2 + $0x160] sm:$0xff]  ;;  %v322_v32 = vld [vmem:[#allocation2 + $0x168] sm:$0xff]  ;;  %v852_v33 = vpack.c.bf16 %v211_v29, %v210_v28  ;;  %v339_v37 = vld [vmem:[#allocation2 + $0x1f0] sm:$0xff]  ;;  %v854_v38 = vpack.c.bf16 %v229_v36, %v228_v35 }
  0x2a   :  { %875 = vmatprep.subr.bf16.mxu1 %v874_v7  ;;  %v884_v34 = vpack.c.bf16 %v322_v32, %v321_v31  ;;  %v340_v39 = vld [vmem:[#allocation2 + $0x1f8] sm:$0xff]  ;;  %v212_v40 = vld [vmem:[#allocation2 + $0x70] sm:$0xff]  ;;  %v627_v48 = vld [vmem:[%s1217_s4 + $0x80] sm:$0xff] }
  0x2b   :  { %v213_v41 = vld [vmem:[#allocation2 + $0x78] sm:$0xff]  ;;  %v886_v42 = vpack.c.bf16 %v340_v39, %v339_v37  ;;  %v323_v44 = vld [vmem:[#allocation2 + $0x170] sm:$0xff]  ;;  %v628_v49 = vld [vmem:[%s1217_s4 + $0x88] sm:$0xff] }
  0x2c   :  { %845 = vmatpush3.bf16.msra.mxu0 %v844_v13  ;;  %v856_v43 = vpack.c.bf16 %v213_v41, %v212_v40  ;;  %v324_v45 = vld [vmem:[#allocation2 + $0x178] sm:$0xff]  ;;  %v420_v51 = vld [vmem:[%s1217_s4] sm:$0xff]  ;;  %v421_v52 = vld [vmem:[%s1217_s4 + $0x8] sm:$0xff]  ;;  %v891_v57 = vpack.c.bf16 %v628_v49, %v627_v48 }
  0x2d   :  { %877 = vmatpush3.bf16.msra.mxu1 %v876_v14  ;;  %847 = vmatprep.subr.bf16.mxu0 %v846_v15  ;;  %v888_v46 = vpack.c.bf16 %v324_v45, %v323_v44  ;;  %v915_v60 = vpack.c.bf16 %v421_v52, %v420_v51  ;;  %v629_v61 = vld [vmem:[%s1217_s4 + $0x90] sm:$0xff]  ;;  %v630_v62 = vld [vmem:[%s1217_s4 + $0x98] sm:$0xff]  ;;  %v631_v5 = vld [vmem:[%s1217_s4 + $0xa0] sm:$0xff] }
  0x2e   :  { %879 = vmatprep.subr.bf16.mxu1 %v878_v19  ;;  %v422_v1 = vld [vmem:[%s1217_s4 + $0x10] sm:$0xff]  ;;  %v423_v2 = vld [vmem:[%s1217_s4 + $0x18] sm:$0xff]  ;;  %v894_v3 = vpack.c.bf16 %v630_v62, %v629_v61  ;;  %v632_v6 = vld [vmem:[%s1217_s4 + $0xa8] sm:$0xff] }
  0x2f   :  { %v918_v4 = vpack.c.bf16 %v423_v2, %v422_v1  ;;  %v424_v7 = vld [vmem:[%s1217_s4 + $0x20] sm:$0xff]  ;;  %v425_v8 = vld [vmem:[%s1217_s4 + $0x28] sm:$0xff]  ;;  %v897_v9 = vpack.c.bf16 %v632_v6, %v631_v5  ;;  %v633_v11 = vld [vmem:[%s1217_s4 + $0xb0] sm:$0xff] }
  0x30   :  { %849 = vmatpush3.bf16.msra.mxu0 %v848_v25  ;;  %v921_v10 = vpack.c.bf16 %v425_v8, %v424_v7  ;;  %v634_v12 = vld [vmem:[%s1217_s4 + $0xb8] sm:$0xff]  ;;  %v426_v13 = vld [vmem:[%s1217_s4 + $0x30] sm:$0xff]  ;;  %v635_v17 = vld [vmem:[%s1217_s4 + $0xc0] sm:$0xff] }
  0x31   :  { %881 = vmatpush3.bf16.msra.mxu1 %v880_v26  ;;  %851 = vmatprep.subr.bf16.mxu0 %v850_v27  ;;  %v427_v14 = vld [vmem:[%s1217_s4 + $0x38] sm:$0xff]  ;;  %v900_v15 = vpack.c.bf16 %v634_v12, %v633_v11  ;;  %v636_v18 = vld [vmem:[%s1217_s4 + $0xc8] sm:$0xff]  ;;  %v428_v19 = vld [vmem:[%s1217_s4 + $0x40] sm:$0xff] }
  0x32   :  { %883 = vmatprep.subr.bf16.mxu1 %v882_v30  ;;  %v924_v16 = vpack.c.bf16 %v427_v14, %v426_v13  ;;  %v429_v20 = vld [vmem:[%s1217_s4 + $0x48] sm:$0xff]  ;;  %v903_v21 = vpack.c.bf16 %v636_v18, %v635_v17  ;;  %v637_v23 = vld [vmem:[%s1217_s4 + $0xd0] sm:$0xff]  ;;  %v638_v24 = vld [vmem:[%s1217_s4 + $0xd8] sm:$0xff] }
  0x33   :  { %v927_v22 = vpack.c.bf16 %v429_v20, %v428_v19  ;;  %v430_v25 = vld [vmem:[%s1217_s4 + $0x50] sm:$0xff]  ;;  %v431_v26 = vld [vmem:[%s1217_s4 + $0x58] sm:$0xff]  ;;  %v906_v27 = vpack.c.bf16 %v638_v24, %v637_v23  ;;  %v639_v29 = vld [vmem:[%s1217_s4 + $0xe0] sm:$0xff] }
  0x34   :  { %853 = vmatpush3.bf16.msra.mxu0 %v852_v33  ;;  %v930_v28 = vpack.c.bf16 %v431_v26, %v430_v25  ;;  %v640_v30 = vld [vmem:[%s1217_s4 + $0xe8] sm:$0xff]  ;;  %v432_v31 = vld [vmem:[%s1217_s4 + $0x60] sm:$0xff]  ;;  %v641_v35 = vld [vmem:[%s1217_s4 + $0xf0] sm:$0xff] }
  0x35   :  { %885 = vmatpush3.bf16.msra.mxu1 %v884_v34  ;;  %855 = vmatprep.subr.bf16.mxu0 %v854_v38  ;;  %v909_v32 = vpack.c.bf16 %v640_v30, %v639_v29  ;;  %v433_v33 = vld [vmem:[%s1217_s4 + $0x68] sm:$0xff]  ;;  %v642_v36 = vld [vmem:[%s1217_s4 + $0xf8] sm:$0xff]  ;;  %v434_v37 = vld [vmem:[%s1217_s4 + $0x70] sm:$0xff] }
  0x36   :  { %887 = vmatprep.subr.bf16.mxu1 %v886_v42  ;;  %v933_v34 = vpack.c.bf16 %v433_v33, %v432_v31  ;;  %v912_v38 = vpack.c.bf16 %v642_v36, %v641_v35  ;;  %v435_v39 = vld [vmem:[%s1217_s4 + $0x78] sm:$0xff] }
  0x37   :  { %v936_v40 = vpack.c.bf16 %v435_v39, %v434_v37 }
  0x38   :  { %857 = vmatpush3.bf16.msra.mxu0 %v856_v43  ;;  %v624_v43 = vld [vmem:[%s1216_s3] ss:$0 sm:$0xff] }
  0x39   :  { %889 = vmatpush3.bf16.msra.mxu1 %v888_v46  ;;  %890 = vmatprep.subr.bf16.mxu0 %v997_v47  ;;  %v626_v46 = vld [vmem:[%s1216_s3 + $0x1] ss:$0 sm:$0xff]  ;;  %s967_s3 = scalar_lea.vmem %s610_s17, 128 }
  0x3a   :  { %914 = vmatprep.subr.bf16.mxu1 %v997_v47  ;;  %p968_p8 = scmp.ne.s32.totalorder %s610_s17, %s967_s3  ;;  %p973_p10 = scmp.lt.s32.totalorder %s967_s3, %s967_s3 }
  0x3c   :  { %p974_p11 = por %p973_p10, %p972_p9 }
  0x3e   :  { %p975_p12 = pnand %p974_p11, %p968_p8 }
  0xee   :  { %v113_v50 = vpop.f32.mrb[0].mxu0 }
  0xef   :  { %v191_v53 = vpop.f32.mrb[0].mxu1  ;;  %v115_v54 = vpop.f32.mrb[1].mxu0  ;;  %v118_v58 = vmax.f32 %v113_v50, 0.0 }
  0xf0   :  { %v119_v55 = vmax.f32 %v115_v54, 0.0  ;;  %v193_v56 = vpop.f32.mrb[1].mxu1  ;;  %v196_v63 = vmax.f32 %v191_v53, 0.0  ;;  %v643_v54 = vld [vmem:[%s1218_s5] ss:$0 sm:$0xff] }
  0xf1   :  { %v197_v59 = vmax.f32 %v193_v56, 0.0 }
  0xf2   :  { %301 = vmatprep.mubr.f32.mxu0 %v119_v55 }
  0xf3   :  { %413 = vmatprep.mubr.f32.mxu1 %v197_v59  ;;  %302 = vmatmul.mubr.f32.vlgmr.msra.gmra.mrb[2].mxu0 %v118_v58 }
  0xf4   :  { %414 = vmatmul.mubr.f32.vlgmr.msra.gmra.mrb[2].mxu1 %v196_v63  ;;  %892 = vmatpush3.bf16.msra.mxu0 %v891_v57 }
  0xf5   :  { %916 = vmatpush3.bf16.msra.mxu1 %v915_v60  ;;  %893 = vmatprep.subr.bf16.mxu0 %v997_v47 }
  0xf6   :  { %917 = vmatprep.subr.bf16.mxu1 %v997_v47  ;;  %780 = vmatprep.mubr.msk.f32.mxu0 %vm998_vm1, %v996_v0 }
  0xf7   :  { %815 = vmatprep.mubr.msk.f32.mxu1 %vm998_vm1, %v996_v0 }
  0xf8   :  { %895 = vmatpush3.bf16.msra.mxu0 %v894_v3 }
  0xf9   :  { %919 = vmatpush3.bf16.msra.mxu1 %v918_v4  ;;  %896 = vmatprep.subr.bf16.mxu0 %v997_v47 }
  0xfa   :  { %920 = vmatprep.subr.bf16.mxu1 %v997_v47 }
  0xfc   :  { %898 = vmatpush3.bf16.msra.mxu0 %v897_v9 }
  0xfd   :  { %922 = vmatpush3.bf16.msra.mxu1 %v921_v10  ;;  %899 = vmatprep.subr.bf16.mxu0 %v997_v47 }
  0xfe   :  { %923 = vmatprep.subr.bf16.mxu1 %v997_v47 }
 0x100   :  { %901 = vmatpush3.bf16.msra.mxu0 %v900_v15 }
 0x101   :  { %925 = vmatpush3.bf16.msra.mxu1 %v924_v16  ;;  %902 = vmatprep.subr.bf16.mxu0 %v997_v47 }
 0x102   :  { %926 = vmatprep.subr.bf16.mxu1 %v997_v47 }
 0x104   :  { %904 = vmatpush3.bf16.msra.mxu0 %v903_v21 }
 0x105   :  { %928 = vmatpush3.bf16.msra.mxu1 %v927_v22  ;;  %905 = vmatprep.subr.bf16.mxu0 %v997_v47 }
 0x106   :  { %929 = vmatprep.subr.bf16.mxu1 %v997_v47 }
 0x108   :  { %907 = vmatpush3.bf16.msra.mxu0 %v906_v27 }
 0x109   :  { %931 = vmatpush3.bf16.msra.mxu1 %v930_v28  ;;  %908 = vmatprep.subr.bf16.mxu0 %v997_v47 }
 0x10a   :  { %932 = vmatprep.subr.bf16.mxu1 %v997_v47 }
 0x10c   :  { %910 = vmatpush3.bf16.msra.mxu0 %v909_v32 }
 0x10d   :  { %934 = vmatpush3.bf16.msra.mxu1 %v933_v34  ;;  %911 = vmatprep.subr.bf16.mxu0 %v997_v47 }
 0x10e   :  { %935 = vmatprep.subr.bf16.mxu1 %v997_v47 }
 0x110   :  { %913 = vmatpush3.bf16.msra.mxu0 %v912_v38 }
 0x111   :  { %937 = vmatpush3.bf16.msra.mxu1 %v936_v40 }
 0x1c6   :  { %v676_v41 = vpop.f32.mrb[2].mxu0 }
 0x1c7   :  { %v711_v42 = vpop.f32.mrb[2].mxu1  ;;  %v677_v44 = vpop.f32.mrb[3].mxu0 }
 0x1c8   :  { %v678_v45 = vadd.f32 %v677_v44, %v676_v41  ;;  %v712_v47 = vpop.f32.mrb[3].mxu1 }
 0x1c9   :  { %v713_v48 = vadd.f32 %v712_v47, %v711_v42 }
 0x1ca   :  { %v304_v49 = vadd.f32 %v678_v45, %v624_v43 }
 0x1cb   :  { %v416_v50 = vadd.f32 %v713_v48, %v626_v46 }
 0x1cc   :  { %v307_v51 = vmax.f32 %v304_v49, 0.0 }
 0x1cd   :  { %v419_v52 = vmax.f32 %v416_v50, 0.0 }
 0x1ce   :  { %816 = vmatmul.mubr.f32.vlgmr.msra.gmra.mrb[4].mxu1 %v307_v51 }
 0x1cf   :  { %781 = vmatmul.mubr.f32.vlgmr.msra.gmra.mrb[4].mxu0 %v419_v52 }
 0x2a1   :  { %v589_v0 = vpop.f32.mrb[4].mxu1 }
 0x2a2   :  { %v519_v53 = vpop.f32.mrb[4].mxu0  ;;  %v817_v55 = vpop.f32.mrb[5].mxu1 }
 0x2a3   :  { %v590_v56 = vadd.f32 %v589_v0, %v519_v53  ;;  %v782_v57 = vpop.f32.mrb[5].mxu0 }
 0x2a5   :  { %v600_v58 = vadd.f32 %v643_v54, %v590_v56 }
 0x2a7   :  { %602 = vst.msk [vmem:[#allocation5] sm:$0xff] %vm601_vm2, %v600_v58 }
 0x2a8   :  { %978 = shalt.err (!%p975_p12)
}
 0x2a9   :  { %s979_s5 = scalar_lea.hbm %s1219_s6, 128 }
 0x2aa   :  { %p980_p13 = scmp.ne.s32.totalorder %s1219_s6, %s979_s5  ;;  %p983_p0 = scmp.lt.u32.totalorder %s979_s5, %s1219_s6 }
 0x2ac   :  { %p985_p1 = pnand %p983_p0, %p980_p13 }
 0x2ae   :  { %988 = shalt.err (!%p985_p1)
}
 0x2af   :  { %612 = dma.vmem_to_hbm [thread:$0]  %s610_s17, 128, %s1219_s6, [#allocation4]  }
 0x2b0   :  { %991 = dma.done.wait [#allocation4], 128  }
 0x2b1   :  { %992 = vsyncadd [#allocation4], 4294967168 }
 0x2b2   :  { %616 = vsyncpa [#allocation3], 1 }
 0x2b3   :  { %617 = vsyncpa [#allocation4], 1 }

</bundles_post_ra>
